<compile_context>
chip_gen: v7x
topology: tpu7x:2x2x1
jax: 0.10.0
libtpu: 0.0.40
codegen_flags: <defaults>
</compile_context>

<pallas_src>
import math
import numpy as np
import jax
import jax.numpy as jnp
from jax import lax
from jax.experimental import pallas as pl
from jax.experimental.pallas import tpu as pltpu


def _make_kernel(head_num, head_dim, eta, M, D):
    H, hd = head_num, head_dim

    def kernel(x_ref, q_ref, wvk_ref, bv_ref, wq_ref, out_ref):
        x = x_ref[0]                                         # (M, D)  bf16
        q = q_ref[0]                                         # (M, D)  bf16
        xb = jnp.broadcast_to(x[None, :, :], (H, M, D))      # (H, M, D)
        qb = jnp.broadcast_to(q[None, :, :], (H, M, D))

        # fused fc_value | fc_key (per-head weight slabs (H, D, 2*hd)), bf16 in,
        # f32 accumulate.  value gets bias + relu; key is bias-free.
        vk = lax.dot_general(xb, wvk_ref[...],
                             (((2,), (1,)), ((0,), (0,))),
                             preferred_element_type=jnp.float32)   # (H, M, 2*hd)
        value = jnp.maximum(vk[..., :hd] + bv_ref[...], 0.0)       # (H, M, hd) f32
        key = vk[..., hd:]                                         # (H, M, hd) f32

        # fc_qry — the 1/sqrt(head_dim) scale is pre-folded into Wq host-side.
        qry = lax.dot_general(qb, wq_ref[...],
                              (((2,), (1,)), ((0,), (0,))),
                              preferred_element_type=jnp.float32)  # (H, M, hd)

        # batched multi-head attention: one score matmul, one softmax, one p@v
        s = lax.dot_general(qry.astype(jnp.bfloat16), key.astype(jnp.bfloat16),
                            (((2,), (2,)), ((0,), (0,))),
                            preferred_element_type=jnp.float32)    # (H, M, M)
        s = s - jnp.max(s, axis=-1, keepdims=True)
        p = jnp.exp(s)
        p = p * pl.reciprocal(jnp.sum(p, axis=-1, keepdims=True), approx=True)
        # dropout(p=0.1) on p is identity in eval mode
        att = lax.dot_general(p.astype(jnp.bfloat16), value.astype(jnp.bfloat16),
                              (((2,), (1,)), ((0,), (0,))),
                              preferred_element_type=jnp.float32)  # (H, M, hd)

        o = jnp.maximum(att + eta * value, 0.0)                    # (H, M, hd) f32
        # heads back to contiguous D-slices, then ONE full-lane-width store
        out_ref[0] = jnp.concatenate([o[h] for h in range(H)], axis=-1)  # (M, D)

    return kernel


def bd_adjust_att_forward(qry_in, pos_input, mask_np, params, head_num, eta=1.0):
    """qry_in, pos_input: (bz, D, N, N); mask_np: static bool numpy (N*N,)."""
    bz, dim, N, _ = pos_input.shape
    D = dim
    H = head_num
    hd = D // H
    idx = np.nonzero(np.asarray(mask_np).reshape(-1))[0]    # static masked indices
    M = int(idx.shape[0])

    # host glue: gather masked positions, move features to the lane axis, cast bf16
    pos_emd = pos_input.reshape(bz, D, N * N)[:, :, idx]     # (bz, D, M)
    qry_m = qry_in.reshape(bz, D, N * N)[:, :, idx]          # (bz, D, M)
    x = jnp.transpose(pos_emd, (0, 2, 1)).astype(jnp.bfloat16)   # (bz, M, D)
    q = jnp.transpose(qry_m, (0, 2, 1)).astype(jnp.bfloat16)     # (bz, M, D)

    Wv, bv, Wk, Wq = params                                  # y = x @ W ; (D, D), (D,)
    # per-head weight slabs with heads leading (no in-kernel lane reshapes)
    Wv_h = Wv.reshape(D, H, hd).transpose(1, 0, 2)                       # (H, D, hd)
    Wk_h = Wk.reshape(D, H, hd).transpose(1, 0, 2)                       # (H, D, hd)
    Wvk_h = jnp.concatenate([Wv_h, Wk_h], axis=-1).astype(jnp.bfloat16)  # (H, D, 2hd)
    Wq_h = ((Wq / math.sqrt(hd)).reshape(D, H, hd)
            .transpose(1, 0, 2)).astype(jnp.bfloat16)                    # (H, D, hd)
    bv_h = bv.reshape(H, hd)[:, None, :].astype(jnp.float32)             # (H, 1, hd)

    kernel = _make_kernel(H, hd, eta, M, D)
    out_masked = pl.pallas_call(
        kernel,
        out_shape=jax.ShapeDtypeStruct((bz, M, D), jnp.float32),
        grid=(bz,),
        in_specs=[
            pl.BlockSpec((1, M, D), lambda b: (b, 0, 0)),
            pl.BlockSpec((1, M, D), lambda b: (b, 0, 0)),
            pl.BlockSpec((H, D, 2 * hd), lambda b: (0, 0, 0)),
            pl.BlockSpec((H, 1, hd), lambda b: (0, 0, 0)),
            pl.BlockSpec((H, D, hd), lambda b: (0, 0, 0)),
        ],
        out_specs=pl.BlockSpec((1, M, D), lambda b: (b, 0, 0)),
        compiler_params=pltpu.CompilerParams(dimension_semantics=("parallel",)),
    )(x, q, Wvk_h, bv_h, Wq_h)                               # (bz, M, D), already relu'd

    # host glue: scatter back into the zero-initialized (bz, D, N*N) output.
    # relu(0) = 0, so unmasked positions stay 0 and no extra relu is needed.
    out_full = jnp.zeros((bz, D, N * N), jnp.float32).at[:, :, idx].set(
        jnp.transpose(out_masked, (0, 2, 1)))
    return out_full.reshape(bz, D, N, N)


def reference(qry_in, pos_input, mask_np, params, head_num, eta=1.0):
    """Pure-JAX f32 transcription of the PyTorch forward (4-D qry_in, eval mode)."""
    bz, dim, N, _ = pos_input.shape
    D = dim
    hd = D // head_num
    idx = np.nonzero(np.asarray(mask_np).reshape(-1))[0]
    M = int(idx.shape[0])
    Wv, bv, Wk, Wq = params

    pos_emd = pos_input.reshape(bz, D, N * N)[:, :, idx]
    q_m = qry_in.reshape(bz, D, N * N)[:, :, idx]
    x = jnp.transpose(pos_emd, (0, 2, 1))
    q = jnp.transpose(q_m, (0, 2, 1))

    value = jax.nn.relu(x @ Wv + bv)
    key = x @ Wk
    qry = q @ Wq
    qry_ = qry.reshape(bz, M, head_num, hd).transpose(0, 2, 1, 3)
    key_ = key.reshape(bz, M, head_num, hd).transpose(0, 2, 3, 1)
    val_ = value.reshape(bz, M, head_num, hd).transpose(0, 2, 1, 3)
    dp = jax.nn.softmax(qry_ @ key_ / math.sqrt(hd), axis=-1)
    att = (dp @ val_).transpose(0, 1, 3, 2).reshape(bz, D, M)
    out_masked = att + eta * 1.0 * jnp.transpose(value, (0, 2, 1))
    out = jnp.zeros((bz, D, N * N), jnp.float32).at[:, :, idx].set(out_masked)
    return jax.nn.relu(out.reshape(bz, D, N, N))


if __name__ == "__main__":
    bz, N = 2, 4
    in_size = hidden = 32          # module requires in_size == hidden (fc_key on pos_emd)
    head_num = 4
    eta = 1.0
    D = hidden

    key = jax.random.PRNGKey(0)
    k1, k2, k3, k4, k5, k6 = jax.random.split(key, 6)
    # deterministic synthetic parameters (y = x @ W, i.e. W == torch_weight.T)
    Wv = jax.random.normal(k1, (D, D), jnp.float32) * 0.1
    bv = jax.random.normal(k2, (D,), jnp.float32) * 0.1
    Wk = jax.random.normal(k3, (D, D), jnp.float32) * 0.1
    Wq = jax.random.normal(k4, (D, D), jnp.float32) * 0.1
    params = (Wv, bv, Wk, Wq)

    pos_input = jax.random.normal(k5, (bz, D, N, N), jnp.float32)
    qry_in = jax.random.normal(k6, (bz, D, N, N), jnp.float32)   # 4-D query path
    mask_np = (np.arange(N * N) % 3 != 0)                        # static bool mask, M=10

    out = bd_adjust_att_forward(qry_in, pos_input, mask_np, params, head_num, eta)
    out = jax.block_until_ready(out)

    ref = reference(qry_in, pos_input, mask_np, params, head_num, eta)
    # kernel uses bf16 MXU inputs + approx-reciprocal softmax vs f32 reference
    np.testing.assert_allclose(np.asarray(out), np.asarray(ref), rtol=3e-2, atol=3e-2)
    print("KERNEL_OK")
</pallas_src>

<mosaic_0001>
module attributes {stable_mosaic.version = 11 : i64} {
  func.func @kernel(%arg0: i32, %arg1: memref<1x10x32xbf16, #tpu.memory_space<vmem>>, %arg2: memref<1x10x32xbf16, #tpu.memory_space<vmem>>, %arg3: memref<4x32x16xbf16, #tpu.memory_space<vmem>>, %arg4: memref<4x1x8xf32, #tpu.memory_space<vmem>>, %arg5: memref<4x32x8xbf16, #tpu.memory_space<vmem>>, %arg6: memref<1x10x32xf32, #tpu.memory_space<vmem>>) attributes {dimension_semantics = [#tpu.dimension_semantics<parallel>], iteration_bounds = array<i64: 2>, scalar_prefetch = 0 : i64, scratch_operands = 0 : i64, tpu.core_type = #tpu.core_type<tc>, window_params = [{transform_indices = @transform_0, window_bounds = array<i64: 1, 10, 32>}, {transform_indices = @transform_1, window_bounds = array<i64: 1, 10, 32>}, {pipeline_mode = #tpu.pipeline_mode<synchronous>, transform_indices = @transform_2, window_bounds = array<i64: 4, 32, 16>}, {pipeline_mode = #tpu.pipeline_mode<synchronous>, transform_indices = @transform_3, window_bounds = array<i64: 4, 1, 8>}, {pipeline_mode = #tpu.pipeline_mode<synchronous>, transform_indices = @transform_4, window_bounds = array<i64: 4, 32, 8>}, {transform_indices = @transform_5, window_bounds = array<i64: 1, 10, 32>}]} {
    %c0 = arith.constant 0 : index
    %c0_0 = arith.constant 0 : index
    %c0_1 = arith.constant 0 : index
    %0 = vector.load %arg1[%c0, %c0_0, %c0_1] : memref<1x10x32xbf16, #tpu.memory_space<vmem>>, vector<1x10x32xbf16>
    %1 = vector.shape_cast %0 : vector<1x10x32xbf16> to vector<10x32xbf16>
    %c0_2 = arith.constant 0 : index
    %c0_3 = arith.constant 0 : index
    %c0_4 = arith.constant 0 : index
    %2 = vector.load %arg2[%c0_2, %c0_3, %c0_4] : memref<1x10x32xbf16, #tpu.memory_space<vmem>>, vector<1x10x32xbf16>
    %3 = vector.shape_cast %2 : vector<1x10x32xbf16> to vector<10x32xbf16>
    %4 = vector.shape_cast %1 : vector<10x32xbf16> to vector<1x10x32xbf16>
    %5 = vector.shape_cast %4 : vector<1x10x32xbf16> to vector<1x10x32xbf16>
    %6 = vector.broadcast %5 : vector<1x10x32xbf16> to vector<4x10x32xbf16>
    %7 = vector.shape_cast %3 : vector<10x32xbf16> to vector<1x10x32xbf16>
    %8 = vector.shape_cast %7 : vector<1x10x32xbf16> to vector<1x10x32xbf16>
    %9 = vector.broadcast %8 : vector<1x10x32xbf16> to vector<4x10x32xbf16>
    %c0_5 = arith.constant 0 : index
    %c0_6 = arith.constant 0 : index
    %c0_7 = arith.constant 0 : index
    %10 = vector.load %arg3[%c0_5, %c0_6, %c0_7] : memref<4x32x16xbf16, #tpu.memory_space<vmem>>, vector<4x32x16xbf16>
    %cst = arith.constant dense<0.000000e+00> : vector<4x10x16xf32>
    %11 = tpu.matmul %6, %10, %cst {dimension_numbers = #tpu.dot_dimension_numbers<[2], [1], [1], [2], [0, 0, 0, 1, 1, 2], [0], [0]>} : vector<4x10x32xbf16>, vector<4x32x16xbf16>, vector<4x10x16xf32> -> vector<4x10x16xf32>
    %12 = vector.extract_strided_slice %11 {offsets = [0, 0, 0], sizes = [4, 10, 8], strides = [1, 1, 1]} : vector<4x10x16xf32> to vector<4x10x8xf32>
    %c0_8 = arith.constant 0 : index
    %c0_9 = arith.constant 0 : index
    %c0_10 = arith.constant 0 : index
    %13 = vector.load %arg4[%c0_8, %c0_9, %c0_10] : memref<4x1x8xf32, #tpu.memory_space<vmem>>, vector<4x1x8xf32>
    %14 = vector.broadcast %13 : vector<4x1x8xf32> to vector<4x10x8xf32>
    %15 = arith.addf %12, %14 : vector<4x10x8xf32>
    %cst_11 = arith.constant 0.000000e+00 : f32
    %16 = vector.broadcast %cst_11 : f32 to vector<4x10x8xf32>
    %17 = arith.maximumf %15, %16 : vector<4x10x8xf32>
    %18 = vector.extract_strided_slice %11 {offsets = [0, 0, 8], sizes = [4, 10, 8], strides = [1, 1, 1]} : vector<4x10x16xf32> to vector<4x10x8xf32>
    %c0_12 = arith.constant 0 : index
    %c0_13 = arith.constant 0 : index
    %c0_14 = arith.constant 0 : index
    %19 = vector.load %arg5[%c0_12, %c0_13, %c0_14] : memref<4x32x8xbf16, #tpu.memory_space<vmem>>, vector<4x32x8xbf16>
    %cst_15 = arith.constant dense<0.000000e+00> : vector<4x10x8xf32>
    %20 = tpu.matmul %9, %19, %cst_15 {dimension_numbers = #tpu.dot_dimension_numbers<[2], [1], [1], [2], [0, 0, 0, 1, 1, 2], [0], [0]>} : vector<4x10x32xbf16>, vector<4x32x8xbf16>, vector<4x10x8xf32> -> vector<4x10x8xf32>
    %21 = arith.truncf %20 : vector<4x10x8xf32> to vector<4x10x8xbf16>
    %22 = arith.truncf %18 : vector<4x10x8xf32> to vector<4x10x8xbf16>
    %cst_16 = arith.constant dense<0.000000e+00> : vector<4x10x10xf32>
    %23 = tpu.matmul %21, %22, %cst_16 {dimension_numbers = #tpu.dot_dimension_numbers<[2], [2], [1], [1], [0, 0, 0, 1, 1, 1], [0], [0]>} : vector<4x10x8xbf16>, vector<4x10x8xbf16>, vector<4x10x10xf32> -> vector<4x10x10xf32>
    %cst_17 = arith.constant dense<0xFF800000> : vector<4x10xf32>
    %24 = vector.multi_reduction <maximumf>, %23, %cst_17 [2] : vector<4x10x10xf32> to vector<4x10xf32>
    %25 = vector.shape_cast %24 : vector<4x10xf32> to vector<4x10x1xf32>
    %26 = vector.broadcast %25 : vector<4x10x1xf32> to vector<4x10x10xf32>
    %27 = arith.subf %23, %26 : vector<4x10x10xf32>
    %28 = math.exp %27 : vector<4x10x10xf32>
    %cst_18 = arith.constant dense<0.000000e+00> : vector<4x10xf32>
    %29 = vector.multi_reduction <add>, %28, %cst_18 [2] : vector<4x10x10xf32> to vector<4x10xf32>
    %30 = vector.shape_cast %29 : vector<4x10xf32> to vector<4x10x1xf32>
    %31 = tpu.reciprocal %30 {approx = true} : vector<4x10x1xf32> -> vector<4x10x1xf32>
    %32 = vector.broadcast %31 : vector<4x10x1xf32> to vector<4x10x10xf32>
    %33 = arith.mulf %28, %32 : vector<4x10x10xf32>
    %34 = arith.truncf %33 : vector<4x10x10xf32> to vector<4x10x10xbf16>
    %35 = arith.truncf %17 : vector<4x10x8xf32> to vector<4x10x8xbf16>
    %cst_19 = arith.constant dense<0.000000e+00> : vector<4x10x8xf32>
    %36 = tpu.matmul %34, %35, %cst_19 {dimension_numbers = #tpu.dot_dimension_numbers<[2], [1], [1], [2], [0, 0, 0, 1, 1, 2], [0], [0]>} : vector<4x10x10xbf16>, vector<4x10x8xbf16>, vector<4x10x8xf32> -> vector<4x10x8xf32>
    %cst_20 = arith.constant 1.000000e+00 : f32
    %37 = vector.broadcast %cst_20 : f32 to vector<4x10x8xf32>
    %38 = arith.mulf %37, %17 : vector<4x10x8xf32>
    %39 = arith.addf %36, %38 : vector<4x10x8xf32>
    %cst_21 = arith.constant 0.000000e+00 : f32
    %40 = vector.broadcast %cst_21 : f32 to vector<4x10x8xf32>
    %41 = arith.maximumf %39, %40 : vector<4x10x8xf32>
    %42 = vector.extract_strided_slice %41 {offsets = [0, 0, 0], sizes = [1, 10, 8], strides = [1, 1, 1]} : vector<4x10x8xf32> to vector<1x10x8xf32>
    %43 = vector.shape_cast %42 : vector<1x10x8xf32> to vector<10x8xf32>
    %44 = vector.extract_strided_slice %41 {offsets = [1, 0, 0], sizes = [1, 10, 8], strides = [1, 1, 1]} : vector<4x10x8xf32> to vector<1x10x8xf32>
    %45 = vector.shape_cast %44 : vector<1x10x8xf32> to vector<10x8xf32>
    %46 = vector.extract_strided_slice %41 {offsets = [2, 0, 0], sizes = [1, 10, 8], strides = [1, 1, 1]} : vector<4x10x8xf32> to vector<1x10x8xf32>
    %47 = vector.shape_cast %46 : vector<1x10x8xf32> to vector<10x8xf32>
    %48 = vector.extract_strided_slice %41 {offsets = [3, 0, 0], sizes = [1, 10, 8], strides = [1, 1, 1]} : vector<4x10x8xf32> to vector<1x10x8xf32>
    %49 = vector.shape_cast %48 : vector<1x10x8xf32> to vector<10x8xf32>
    %50 = tpu.concatenate %43, %45, %47, %49 in 1 : vector<10x8xf32>, vector<10x8xf32>, vector<10x8xf32>, vector<10x8xf32> -> vector<10x32xf32>
    %c0_22 = arith.constant 0 : index
    %c0_23 = arith.constant 0 : index
    %c0_24 = arith.constant 0 : index
    %51 = vector.load %arg6[%c0_22, %c0_23, %c0_24] : memref<1x10x32xf32, #tpu.memory_space<vmem>>, vector<1x10x32xf32>
    %52 = vector.shape_cast %51 : vector<1x10x32xf32> to vector<10x32xf32>
    %53 = vector.shape_cast %50 : vector<10x32xf32> to vector<1x10x32xf32>
    tpu.vector_store %arg6[%c0_22, %c0_23, %c0_24], %53 {strides = array<i32>} : memref<1x10x32xf32, #tpu.memory_space<vmem>>, vector<1x10x32xf32>,
    return
  }
  func.func @transform_0(%arg0: i32) -> (i32, i32, i32) {
    %c0_i32 = arith.constant 0 : i32
    %c0_i32_0 = arith.constant 0 : i32
    %c0_i32_1 = arith.constant 0 : i32
    return %arg0, %c0_i32, %c0_i32_0 : i32, i32, i32
  }
  func.func @transform_1(%arg0: i32) -> (i32, i32, i32) {
    %c0_i32 = arith.constant 0 : i32
    %c0_i32_0 = arith.constant 0 : i32
    %c0_i32_1 = arith.constant 0 : i32
    return %arg0, %c0_i32, %c0_i32_0 : i32, i32, i32
  }
  func.func @transform_2(%arg0: i32) -> (i32, i32, i32) {
    %c0_i32 = arith.constant 0 : i32
    %c0_i32_0 = arith.constant 0 : i32
    %c0_i32_1 = arith.constant 0 : i32
    %c0_i32_2 = arith.constant 0 : i32
    return %c0_i32, %c0_i32_0, %c0_i32_1 : i32, i32, i32
  }
  func.func @transform_3(%arg0: i32) -> (i32, i32, i32) {
    %c0_i32 = arith.constant 0 : i32
    %c0_i32_0 = arith.constant 0 : i32
    %c0_i32_1 = arith.constant 0 : i32
    %c0_i32_2 = arith.constant 0 : i32
    return %c0_i32, %c0_i32_0, %c0_i32_1 : i32, i32, i32
  }
  func.func @transform_4(%arg0: i32) -> (i32, i32, i32) {
    %c0_i32 = arith.constant 0 : i32
    %c0_i32_0 = arith.constant 0 : i32
    %c0_i32_1 = arith.constant 0 : i32
    %c0_i32_2 = arith.constant 0 : i32
    return %c0_i32, %c0_i32_0, %c0_i32_1 : i32, i32, i32
  }
  func.func @transform_5(%arg0: i32) -> (i32, i32, i32) {
    %c0_i32 = arith.constant 0 : i32
    %c0_i32_0 = arith.constant 0 : i32
    %c0_i32_1 = arith.constant 0 : i32
    return %arg0, %c0_i32, %c0_i32_0 : i32, i32, i32
  }
}

</mosaic_0001>

<bundles_post_ra>
// kernel: tpu_custom_call.1
= control target key start
LH: loop header
LB: loop body
LE: loop exit
PB: predicated region body
PF: predicated region fallthrough
CT: control target
= control target key end

     0   :  { %s1687_s18 = smov 0   ;;  %s1937_s0 = inlined_call_operand.vmem [shape: bf16[2,10,32], index: 0, kind: input, shape index: {}]   ;;  %s1938_s1 = inlined_call_operand.vmem [shape: bf16[2,10,32], index: 1, kind: input, shape index: {}]   ;;  %s1939_s2 = inlined_call_operand.vmem [shape: bf16[4,32,16], index: 2, kind: input, shape index: {}]   ;;  %s1940_s3 = inlined_call_operand.vmem [shape: f32[4,1,8], index: 3, kind: input, shape index: {}]   ;;  %s1941_s4 = inlined_call_operand.vmem [shape: bf16[4,32,8], index: 4, kind: input, shape index: {}]   ;;  %s1942_s5 = inlined_call_operand.vmem [shape: f32[2,10,32], index: 5, kind: output, shape index: {}]  }
   0x1 LB: > { %s1373_s19 = sadd.s32 4294967295, %s1649_s18   ;;  %p1377_p0 = scmp.ge.s32.totalorder %s1649_s18, 1  ;;  %s1649_s18 = sphi %s1687_s18, %s15_s18  }
   0x2   : > { %p197_p1 = scmp.lt.s32.totalorder %s1649_s18, 3 }
   0x4   : > { %p198_p2 = pnand %p1377_p0, %p197_p1 }
   0x5   : > { %v1593_v0 = vld [vmem:[%s1939_s2] sm:$0xff] (!%p198_p2)   ;;  %v1651_v1 = vmov (!%p198_p2), 0.0   ;;  %v1594_v2 = vld [vmem:[%s1939_s2 + $0x10] sm:$0xff] (!%p198_p2)   ;;  %v1595_v3 = vld [vmem:[%s1939_s2 + $0x8] sm:$0xff] (!%p198_p2)   ;;  %vm1652_vm0 = vmmov (!%p198_p2), 0   ;;  %p230_p3 = scmp.lt.s32.totalorder (!%p198_p2), %s1373_s19, 1 }
   0x6   : > { %201 = sbr.rel (%p198_p2) target bundleno = 1239 (0x4d7), region = 40  ;;  %1467 = vmatprep.subr.bf16.mxu0 (!%p198_p2), %v1651_v1  ;;  %1475 = vmatprep.subr.bf16.mxu1 (!%p198_p2), %v1651_v1  ;;  %v1596_v4 = vld [vmem:[%s1939_s2 + $0x18] sm:$0xff] (!%p198_p2)   ;;  %v1598_v5 = vld [vmem:[%s1939_s2 + $0x20] sm:$0xff] (!%p198_p2)   ;;  %vm283_vm1 = vcmask (!%p198_p2), 261120   ;;  %v1600_v6 = vld [vmem:[%s1939_s2 + $0x30] sm:$0xff] (!%p198_p2)   ;;  %vm778_vm2 = vcmask (!%p198_p2), 64512  }
   0x7   : > { %1468 = vmatpush3.bf16.msra.mxu0 (!%p198_p2), %v1593_v0  ;;  %1471 = vmatprep.mubr.msk.bf16.mxu0 (!%p198_p2), %vm1652_vm0, %v1651_v1  ;;  %v1599_v8 = vld [vmem:[%s1939_s2 + $0x28] sm:$0xff] (!%p198_p2)   ;;  %v1601_v9 = vld [vmem:[%s1939_s2 + $0x38] sm:$0xff] (!%p198_p2)   ;;  %v1602_v10 = vld [vmem:[%s1941_s4] sm:$0xff] (!%p198_p2)   ;;  %vm1077_vm3 = vcmask (!%p198_p2), 1044480   ;;  %vm976_vm4 = vcmask (!%p198_p2), 80896   ;;  %vm980_vm5 = vcmask (!%p198_p2), 74752  }
   0x8   : > { %1476 = vmatpush3.bf16.msra.mxu1 (!%p198_p2), %v1594_v2  ;;  %1469 = vmatprep.subr.bf16.mxu0 (!%p198_p2), %v1651_v1  ;;  %v1604_v11 = vld [vmem:[%s1941_s4 + $0x10] sm:$0xff] (!%p198_p2)   ;;  %v1603_v12 = vld [vmem:[%s1941_s4 + $0x8] sm:$0xff] (!%p198_p2)   ;;  %v1606_v13 = vld [vmem:[%s1941_s4 + $0x18] sm:$0xff] (!%p198_p2)   ;;  %s1654_s22 = smov (!%p198_p2), 8   ;;  %s1655_s23 = smov (!%p198_p2), 16   ;;  %vm1297_vm6 = vcmask (!%p198_p2), 130048  }
   0x9   : > { %1477 = vmatprep.subr.bf16.mxu1 (!%p198_p2), %v1651_v1  ;;  %1479 = vmatprep.mubr.msk.bf16.mxu1 (!%p198_p2), %vm1652_vm0, %v1651_v1  ;;  %v1607_v15 = vld [vmem:[%s1941_s4 + $0x20] sm:$0xff] (!%p198_p2)   ;;  %v1609_v16 = vld [vmem:[%s1941_s4 + $0x30] sm:$0xff] (!%p198_p2)   ;;  %v1608_v17 = vld [vmem:[%s1941_s4 + $0x28] sm:$0xff] (!%p198_p2)   ;;  %s1656_s24 = smov (!%p198_p2), 24   ;;  %vm1300_vm7 = vcmask (!%p198_p2), 195584   ;;  %vm1304_vm8 = vcmask (!%p198_p2), 254976  }
   0xa   : > { %v1610_v18 = vld [vmem:[%s1941_s4 + $0x38] sm:$0xff] (!%p198_p2)   ;;  %v1397_v61 = vld [vmem:[%s1940_s3] ss:$0 sm:$0xff] (!%p198_p2)  ;;  %v1398_v2 = vld [vmem:[%s1940_s3 + $0x1] ss:$0 sm:$0xff] (!%p198_p2) }
   0xb   : > { %1470 = vmatpush3.bf16.msra.mxu0 (!%p198_p2), %v1595_v3 }
   0xc   : > { %1478 = vmatpush3.bf16.msra.mxu1 (!%p198_p2), %v1596_v4  ;;  %1483 = vmatprep.subr.bf16.mxu0 (!%p198_p2), %v1651_v1 }
   0xd   : > { %s1944_s19 = smov (!%p230_p3, %s1373_s19), 1  ;;  %1491 = vmatprep.subr.bf16.mxu1 %v1651_v1 }
   0xe   : > { %s1424_s28 = sshll.u32 %s1944_s19, 3  ;;  %s1426_s25 = sshll.u32 %s1944_s19, 4 }
   0xf   : > { %s234_s8 = scalar_lea.vmem %s1937_s0, %s1424_s28  ;;  %s1727_s11 = scalar_lea.vmem %s1938_s1, %s1424_s28 }
  0x10   : > { %v1597_v7 = vld [vmem:[%s234_s8] sm:$0x1f]   ;;  %s244_s28 = scalar_lea.vmem %s1942_s5, %s1426_s25 }
  0x11   : > { %1472 = vmatmul.mubr.msk.bf16.vlgmr.msra.gmra.mrb[0].mxu0 %vm283_vm1, %v1597_v7  ;;  %1480 = vmatmul.mubr.msk.bf16.vlgmr.msra.gmra.mrb[0].mxu1 %vm283_vm1, %v1597_v7  ;;  %v1605_v14 = vld [vmem:[%s1727_s11] sm:$0x1f]   ;;  %s1653_s11 = smov 120  }
  0x12   : > { %1484 = vmatpush3.bf16.msra.mxu0 %v1598_v5  ;;  %1492 = vmatpush3.bf16.msra.mxu1 %v1600_v6 }
  0x13   : > { %1485 = vmatprep.subr.bf16.mxu0 %v1651_v1  ;;  %1487 = vmatprep.mubr.msk.bf16.mxu0 %vm1652_vm0, %v1651_v1 }
  0x14   : > { %1493 = vmatprep.subr.bf16.mxu1 %v1651_v1  ;;  %1495 = vmatprep.mubr.msk.bf16.mxu1 %vm1652_vm0, %v1651_v1 }
  0x16   : > { %1486 = vmatpush3.bf16.msra.mxu0 %v1599_v8  ;;  %1494 = vmatpush3.bf16.msra.mxu1 %v1601_v9 }
  0x17   : > { %1499 = vmatprep.subr.bf16.mxu0 %v1651_v1  ;;  %1507 = vmatprep.subr.bf16.mxu1 %v1651_v1 }
  0x19   : > { %1488 = vmatmul.mubr.msk.bf16.vlgmr.msra.gmra.mrb[4].mxu0 %vm283_vm1, %v1597_v7  ;;  %1496 = vmatmul.mubr.msk.bf16.vlgmr.msra.gmra.mrb[4].mxu1 %vm283_vm1, %v1597_v7 }
  0x1a   : > { %1500 = vmatpush3.bf16.msra.mxu0 %v1602_v10  ;;  %1508 = vmatpush3.bf16.msra.mxu1 %v1604_v11 }
  0x1b   : > { %1501 = vmatprep.subr.bf16.mxu0 %v1651_v1  ;;  %1503 = vmatprep.mubr.msk.bf16.mxu0 %vm1652_vm0, %v1651_v1 }
  0x1c   : > { %1509 = vmatprep.subr.bf16.mxu1 %v1651_v1  ;;  %1511 = vmatprep.mubr.msk.bf16.mxu1 %vm1652_vm0, %v1651_v1 }
  0x1e   : > { %1502 = vmatpush3.bf16.msra.mxu0 %v1603_v12  ;;  %1510 = vmatpush3.bf16.msra.mxu1 %v1606_v13 }
  0x1f   : > { %1515 = vmatprep.subr.bf16.mxu0 %v1651_v1  ;;  %1523 = vmatprep.subr.bf16.mxu1 %v1651_v1 }
  0x21   : > { %1504 = vmatmul.mubr.msk.bf16.vlgmr.msra.gmra.mrb[8].mxu0 %vm283_vm1, %v1605_v14  ;;  %1512 = vmatmul.mubr.msk.bf16.vlgmr.msra.gmra.mrb[8].mxu1 %vm283_vm1, %v1605_v14 }
  0x22   : > { %1516 = vmatpush3.bf16.msra.mxu0 %v1607_v15  ;;  %1524 = vmatpush3.bf16.msra.mxu1 %v1609_v16 }
  0x23   : > { %1517 = vmatprep.subr.bf16.mxu0 %v1651_v1  ;;  %1519 = vmatprep.mubr.msk.bf16.mxu0 %vm1652_vm0, %v1651_v1 }
  0x24   : > { %1525 = vmatprep.subr.bf16.mxu1 %v1651_v1  ;;  %1527 = vmatprep.mubr.msk.bf16.mxu1 %vm1652_vm0, %v1651_v1 }
  0x26   : > { %1518 = vmatpush3.bf16.msra.mxu0 %v1608_v17  ;;  %1526 = vmatpush3.bf16.msra.mxu1 %v1610_v18 }
  0x27   : > { %1531 = vmatprep.subr.bf16.mxu0 %v1651_v1  ;;  %1537 = vmatprep.subr.bf16.mxu1 %v1651_v1 }
  0x29   : > { %1520 = vmatmul.mubr.msk.bf16.vlgmr.msra.gmra.mrb[12].mxu0 %vm283_vm1, %v1605_v14  ;;  %1528 = vmatmul.mubr.msk.bf16.vlgmr.msra.gmra.mrb[12].mxu1 %vm283_vm1, %v1605_v14 }
  0x2a   : > { %1533 = vmatprep.mubr.msk.bf16.mxu0 %vm1652_vm0, %v1651_v1  ;;  %1539 = vmatprep.mubr.msk.bf16.mxu1 %vm1652_vm0, %v1651_v1 }
  0xe4   : > { %v321_v19 = vpop.f32.mrb[0].mxu0  ;;  %v374_v20 = vpop.f32.mrb[0].mxu1 }
  0xe5   : > { %v1473_v21 = vpop.f32.mrb[1].mxu0  ;;  %v1481_v22 = vpop.f32.mrb[1].mxu1  ;;  %v1824_v3 = vadd.f32 %v1397_v61, %v321_v19  ;;  %v1828_v6 = vadd.f32 %v1398_v2, %v374_v20 }
  0xe6   : > { %v324_v23 = vpop.f32.mrb[2].mxu0  ;;  %v377_v24 = vpop.f32.mrb[2].mxu1 }
  0xe7   : > { %v1474_v25 = vpop.f32.mrb[3].mxu0  ;;  %v1482_v26 = vpop.f32.mrb[3].mxu1  ;;  %v772_v27 = vpack.c.bf16 %v377_v24, %v374_v20  ;;  %v771_v28 = vpack.c.bf16 %v324_v23, %v321_v19  ;;  %v1818_v63 = vadd.f32 %v1397_v61, %v324_v23  ;;  %v1831_v8 = vadd.f32 %v1398_v2, %v377_v24 }
  0xe8   : > { %v523_v9 = vmax.f32 %v1824_v3, 0.0  ;;  %v525_v12 = vmax.f32 %v1828_v6, 0.0 }
  0xe9   : > { %776 = vrot.lane.b32.xlu0 %v771_v28, %s1653_s11  ;;  %v524_v7 = vmax.f32 %v1818_v63, 0.0  ;;  %v526_v14 = vmax.f32 %v1831_v8, 0.0 }
  0xeb   : > { %v1070_v13 = vpack.c.bf16 %v524_v7, %v523_v9  ;;  %v1071_v15 = vpack.c.bf16 %v526_v14, %v525_v12 }
  0xec   : > { %v1801_v29 = vpop.f32.mrb[4].mxu0  ;;  %v1803_v30 = vpop.f32.mrb[4].mxu1 }
  0xed   : > { %v1489_v31 = vpop.f32.mrb[5].mxu0  ;;  %v1497_v32 = vpop.f32.mrb[5].mxu1  ;;  %827 = vrot.lane.b32.xlu0 %v772_v27, %s1653_s11  ;;  %v1079_v16 = vsel %vm1077_vm3, %v1070_v13, 0  ;;  %v1126_v17 = vsel %vm1077_vm3, %v1071_v15, 0 }
  0xee   : > { %v1805_v33 = vpop.f32.mrb[6].mxu0  ;;  %v1807_v34 = vpop.f32.mrb[6].mxu1 }
  0xef   : > { %v1490_v35 = vpop.f32.mrb[7].mxu0  ;;  %v773_v36 = vpack.c.bf16 %v1805_v33, %v1801_v29  ;;  %v1498_v37 = vpop.f32.mrb[7].mxu1  ;;  %v774_v38 = vpack.c.bf16 %v1807_v34, %v1803_v30 }
  0xf1   : > { %877 = vrot.lane.b32.xlu1 %v773_v36, %s1653_s11 }
  0xf4   : > { %v601_v39 = vpop.f32.mrb[8].mxu0  ;;  %v654_v40 = vpop.f32.mrb[8].mxu1 }
  0xf5   : > { %927 = vrot.lane.b32.xlu1 %v774_v38, %s1653_s11  ;;  %v1505_v41 = vpop.f32.mrb[9].mxu0  ;;  %v1513_v42 = vpop.f32.mrb[9].mxu1 }
  0xf6   : > { %v604_v43 = vpop.f32.mrb[10].mxu0  ;;  %v657_v44 = vpop.f32.mrb[10].mxu1 }
  0xf7   : > { %v767_v45 = vpack.c.bf16 %v604_v43, %v601_v39  ;;  %v1506_v46 = vpop.f32.mrb[11].mxu0  ;;  %v768_v47 = vpack.c.bf16 %v657_v44, %v654_v40  ;;  %v1514_v48 = vpop.f32.mrb[11].mxu1 }
  0xfc   : > { %v707_v49 = vpop.f32.mrb[12].mxu0  ;;  %v760_v50 = vpop.f32.mrb[12].mxu1 }
  0xfd   : > { %v1521_v51 = vpop.f32.mrb[13].mxu0  ;;  %v1529_v52 = vpop.f32.mrb[13].mxu1 }
  0xfe   : > { %v710_v53 = vpop.f32.mrb[14].mxu0  ;;  %v763_v54 = vpop.f32.mrb[14].mxu1 }
  0xff   : > { %v769_v55 = vpack.c.bf16 %v710_v53, %v707_v49  ;;  %v1522_v56 = vpop.f32.mrb[15].mxu0  ;;  %v770_v57 = vpack.c.bf16 %v763_v54, %v760_v50  ;;  %v1530_v58 = vpop.f32.mrb[15].mxu1 }
 0x15b   : > { %v777_v59 = vpop.permute.xlu0 %776 }
 0x15c   : > { %v783_v60 = vsel %vm778_vm2, %v777_v59, 0 }
 0x15d   : > { %1532 = vmatpush3.bf16.xpose.msra.mxu0 %v783_v60 }
 0x15e   : > { %1543 = vmatprep.subr.bf16.mxu0 %v1651_v1 }
 0x15f   : > { %v828_v62 = vpop.permute.xlu0 %827 }
 0x160   : > { %v833_v0 = vsel %vm778_vm2, %v828_v62, 0 }
 0x161   : > { %1538 = vmatpush3.bf16.xpose.msra.mxu1 %v833_v0 }
 0x162   : > { %1549 = vmatprep.subr.bf16.mxu1 %v1651_v1 }
 0x163   : > { %v878_v4 = vpop.permute.xlu1 %877 }
 0x164   : > { %v883_v5 = vsel %vm778_vm2, %v878_v4, 0  ;;  %1534 = vmatmul.mubr.msk.bf16.vlgmr.msra.gmra.mrb[16].mxu0 %vm778_vm2, %v767_v45 }
 0x165   : > { %1544 = vmatpush3.bf16.xpose.msra.mxu0 %v883_v5  ;;  %1545 = vmatprep.mubr.msk.bf16.mxu0 %vm1652_vm0, %v1651_v1 }
 0x166   : > { %1555 = vmatprep.subr.bf16.mxu0 %v1651_v1 }
 0x167   : > { %v928_v10 = vpop.permute.xlu1 %927 }
 0x168   : > { %v933_v11 = vsel %vm778_vm2, %v928_v10, 0  ;;  %1540 = vmatmul.mubr.msk.bf16.vlgmr.msra.gmra.mrb[16].mxu1 %vm778_vm2, %v768_v47 }
 0x169   : > { %1550 = vmatpush3.bf16.xpose.msra.mxu1 %v933_v11  ;;  %1551 = vmatprep.mubr.msk.bf16.mxu1 %vm1652_vm0, %v1651_v1 }
 0x16a   : > { %1561 = vmatprep.subr.bf16.mxu1 %v1651_v1 }
 0x16c   : > { %1546 = vmatmul.mubr.msk.bf16.vlgmr.msra.gmra.mrb[20].mxu0 %vm778_vm2, %v769_v55 }
 0x16d   : > { %1556 = vmatpush3.bf16.msra.mxu0 %v1079_v16  ;;  %1557 = vmatprep.mubr.msk.bf16.mxu0 %vm1652_vm0, %v1651_v1 }
 0x16e   : > { %1567 = vmatprep.subr.bf16.mxu0 %v1651_v1 }
 0x170   : > { %1552 = vmatmul.mubr.msk.bf16.vlgmr.msra.gmra.mrb[20].mxu1 %vm778_vm2, %v770_v57 }
 0x171   : > { %1562 = vmatpush3.bf16.msra.mxu1 %v1126_v17  ;;  %1563 = vmatprep.mubr.msk.bf16.mxu1 %vm1652_vm0, %v1651_v1 }
 0x172   : > { %1573 = vmatprep.subr.bf16.mxu1 %v1651_v1 }
 0x237   : > { %v819_v18 = vpop.f32.mrb[16].mxu0 }
 0x238   : > { %v1535_v19 = vpop.f32.mrb[17].mxu0  ;;  %v977_v20 = vsel %vm976_vm4, %v819_v18, -inf }
 0x239   : > { %978 = vmax.xlane.f32.xlu0 %v977_v20  ;;  %v822_v21 = vpop.f32.mrb[18].mxu0 }
 0x23a   : > { %v1536_v22 = vpop.f32.mrb[19].mxu0  ;;  %v981_v23 = vsel %vm980_vm5, %v822_v21, -inf }
 0x23b   : > { %v869_v24 = vpop.f32.mrb[16].mxu1  ;;  %982 = vmax.xlane.f32.xlu1 %v981_v23 }
 0x23c   : > { %v1541_v25 = vpop.f32.mrb[17].mxu1  ;;  %v984_v26 = vsel %vm976_vm4, %v869_v24, -inf }
 0x23d   : > { %v872_v27 = vpop.f32.mrb[18].mxu1  ;;  %985 = vmax.xlane.f32.xlu0 %v984_v26 }
 0x23e   : > { %v1542_v28 = vpop.f32.mrb[19].mxu1  ;;  %v987_v35 = vsel %vm980_vm5, %v872_v27, -inf }
 0x23f   : > { %v919_v31 = vpop.f32.mrb[20].mxu0 }
 0x240   : > { %v1547_v32 = vpop.f32.mrb[21].mxu0  ;;  %v990_v36 = vsel %vm976_vm4, %v919_v31, -inf }
 0x241   : > { %988 = vmax.xlane.f32.xlu0 %v987_v35  ;;  %991 = vmax.xlane.f32.xlu1 %v990_v36  ;;  %v922_v37 = vpop.f32.mrb[22].mxu0 }
 0x242   : > { %v1548_v38 = vpop.f32.mrb[23].mxu0  ;;  %v993_v42 = vsel %vm980_vm5, %v922_v37, -inf }
 0x243   : > { %v969_v39 = vpop.f32.mrb[20].mxu1 }
 0x244   : > { %v1553_v40 = vpop.f32.mrb[21].mxu1  ;;  %v996_v41 = vsel %vm976_vm4, %v969_v39, -inf }
 0x245   : > { %v972_v43 = vpop.f32.mrb[22].mxu1  ;;  %997 = vmax.xlane.f32.xlu1 %v996_v41  ;;  %994 = vmax.xlane.f32.xlu0 %v993_v42  ;;  %v1400_v42 = vld [vmem:[%s1940_s3 + $0x3] ss:$0 sm:$0xff] }
 0x246   : > { %v1554_v44 = vpop.f32.mrb[23].mxu1  ;;  %v999_v45 = vsel %vm980_vm5, %v972_v43, -inf }
 0x249   : > { %1000 = vmax.xlane.f32.xlu0 %v999_v45 }
 0x2c6   : > { %v979_v46 = vpop.xlane.xlu0 %978 }
 0x2c7   : > { %v1002_v47 = vsub.f32 %v819_v18, %v979_v46 }
 0x2c8   : > { %v983_v48 = vpop.xlane.xlu1 %982 }
 0x2c9   : > { %v1010_v49 = vmul.f32 1.442695, %v1002_v47  ;;  %v1003_v50 = vsub.f32 %v822_v21, %v983_v48  ;;  %v1897_v47 = vadd.f32 %v1400_v42, %v1803_v30 }
 0x2ca   : > { %v986_v51 = vpop.xlane.xlu0 %985 }
 0x2cb   : > { %1611 = vpow2.f32 %v1010_v49  ;;  %v1012_v52 = vmul.f32 1.442695, %v1003_v50  ;;  %v1004_v53 = vsub.f32 %v869_v24, %v986_v51 }
 0x2cd   : > { %1613 = vpow2.f32 %v1012_v52  ;;  %v1014_v54 = vmul.f32 1.442695, %v1004_v53  ;;  %v529_v53 = vmax.f32 %v1897_v47, 0.0 }
 0x2ce   : > { %v989_v55 = vpop.xlane.xlu0 %988  ;;  %v992_v56 = vpop.xlane.xlu1 %991 }
 0x2cf   : > { %1615 = vpow2.f32 %v1014_v54  ;;  %v1005_v57 = vsub.f32 %v872_v27, %v989_v55  ;;  %v1006_v58 = vsub.f32 %v919_v31, %v992_v56 }
 0x2d1   : > { %v1016_v59 = vmul.f32 1.442695, %v1005_v57  ;;  %v1018_v60 = vmul.f32 1.442695, %v1006_v58 }
 0x2d2   : > { %v998_v61 = vpop.xlane.xlu1 %997  ;;  %v995_v62 = vpop.xlane.xlu0 %994 }
 0x2d3   : > { %1617 = vpow2.f32 %v1016_v59  ;;  %v1008_v0 = vsub.f32 %v969_v39, %v998_v61  ;;  %v1007_v2 = vsub.f32 %v922_v37, %v995_v62  ;;  %v1399_v37 = vld [vmem:[%s1940_s3 + $0x2] ss:$0 sm:$0xff] }
 0x2d4   : > { %1619 = vpow2.f32 %v1018_v60  ;;  %v1886_v39 = vadd.f32 %v1399_v37, %v1801_v29  ;;  %v1889_v40 = vadd.f32 %v1399_v37, %v1805_v33  ;;  %v1900_v29 = vadd.f32 %v1400_v42, %v1807_v34 }
 0x2d5   : > { %v1612_v4 = vpop.eup %1611  ;;  %v1022_v5 = vmul.f32 1.442695, %v1008_v0  ;;  %v1020_v10 = vmul.f32 1.442695, %v1007_v2 }
 0x2d6   : > { %v1001_v11 = vpop.xlane.xlu0 %1000  ;;  %v1026_v13 = vsel %vm976_vm4, %v1612_v4, 0.0  ;;  %v527_v44 = vmax.f32 %v1886_v39, 0.0  ;;  %v528_v45 = vmax.f32 %v1889_v40, 0.0  ;;  %v530_v54 = vmax.f32 %v1900_v29, 0.0 }
 0x2d7   : > { %v1614_v15 = vpop.eup %1613  ;;  %1621 = vpow2.f32 %v1022_v5  ;;  %v1009_v16 = vsub.f32 %v972_v43, %v1001_v11  ;;  %1027 = vadd.xlane.f32.xlu1 %v1026_v13 }
 0x2d8   : > { %1623 = vpow2.f32 %v1020_v10  ;;  %v1029_v17 = vsel %vm980_vm5, %v1614_v15, 0.0  ;;  %v1072_v50 = vpack.c.bf16 %v528_v45, %v527_v44  ;;  %v1073_v58 = vpack.c.bf16 %v530_v54, %v529_v53 }
 0x2d9   : > { %v1616_v18 = vpop.eup %1615  ;;  %v1024_v19 = vmul.f32 1.442695, %v1009_v16  ;;  %1030 = vadd.xlane.f32.xlu0 %v1029_v17 }
 0x2da   : > { %v1032_v20 = vsel %vm976_vm4, %v1616_v18, 0.0  ;;  %v1173_v34 = vsel %vm1077_vm3, %v1072_v50, 0  ;;  %v1220_v0 = vsel %vm1077_vm3, %v1073_v58, 0 }
 0x2db   : > { %1625 = vpow2.f32 %v1024_v19  ;;  %1033 = vadd.xlane.f32.xlu1 %v1032_v20 }
 0x2dd   : > { %v1618_v21 = vpop.eup %1617 }
 0x2de   : > { %v1874_v22 = vpop.eup %1619  ;;  %v1035_v23 = vsel %vm980_vm5, %v1618_v21, 0.0 }
 0x2df   : > { %v1038_v24 = vsel %vm976_vm4, %v1874_v22, 0.0  ;;  %1036 = vadd.xlane.f32.xlu0 %v1035_v23 }
 0x2e0   : > { %1039 = vadd.xlane.f32.xlu1 %v1038_v24 }
 0x2e1   : > { %v1622_v25 = vpop.eup %1621 }
 0x2e2   : > { %v1624_v26 = vpop.eup %1623  ;;  %v1044_v27 = vsel %vm976_vm4, %v1622_v25, 0.0 }
 0x2e3   : > { %v1041_v28 = vsel %vm980_vm5, %v1624_v26, 0.0 }
 0x2e4   : > { %1045 = vadd.xlane.f32.xlu1 %v1044_v27  ;;  %1042 = vadd.xlane.f32.xlu0 %v1041_v28 }
 0x2e5   : > { %v1626_v31 = vpop.eup %1625 }
 0x2e6   : > { %v1047_v32 = vsel %vm980_vm5, %v1626_v31, 0.0 }
 0x2e8   : > { %1048 = vadd.xlane.f32.xlu0 %v1047_v32 }
 0x364   : > { %v1028_v35 = vpop.xlane.xlu1 %1027 }
 0x365   : > { %1627 = vrcp.f32 %v1028_v35 }
 0x366   : > { %v1031_v36 = vpop.xlane.xlu0 %1030 }
 0x367   : > { %1629 = vrcp.f32 %v1031_v36 }
 0x368   : > { %v1034_v38 = vpop.xlane.xlu1 %1033 }
 0x369   : > { %1631 = vrcp.f32 %v1034_v38 }
 0x36c   : > { %v1037_v41 = vpop.xlane.xlu0 %1036 }
 0x36d   : > { %v1040_v43 = vpop.xlane.xlu1 %1039  ;;  %1633 = vrcp.f32 %v1037_v41 }
 0x36e   : > { %1635 = vrcp.f32 %v1040_v43 }
 0x36f   : > { %v1628_v46 = vpop.eup %1627 }
 0x370   : > { %v1058_v51 = vmul.f32 %v1628_v46, %v1612_v4 }
 0x371   : > { %v1630_v33 = vpop.eup %1629  ;;  %v1046_v48 = vpop.xlane.xlu1 %1045 }
 0x372   : > { %v1043_v49 = vpop.xlane.xlu0 %1042  ;;  %v1059_v52 = vmul.f32 %v1630_v33, %v1614_v15 }
 0x373   : > { %1637 = vrcp.f32 %v1043_v49  ;;  %v1632_v55 = vpop.eup %1631 }
 0x374   : > { %1639 = vrcp.f32 %v1046_v48  ;;  %v1066_v30 = vpack.c.bf16 %v1059_v52, %v1058_v51  ;;  %v1060_v59 = vmul.f32 %v1632_v55, %v1616_v18 }
 0x376   : > { %v1049_v56 = vpop.xlane.xlu0 %1048  ;;  %1558 = vmatmul.mubr.msk.bf16.vlgmr.msra.gmra.mrb[24].mxu0 %vm976_vm4, %v1066_v30 }
 0x377   : > { %1641 = vrcp.f32 %v1049_v56  ;;  %v1634_v57 = vpop.eup %1633  ;;  %1568 = vmatpush3.bf16.msra.mxu0 %v1173_v34  ;;  %1569 = vmatprep.mubr.msk.bf16.mxu0 %vm1652_vm0, %v1651_v1 }
 0x378   : > { %v1061_v60 = vmul.f32 %v1634_v57, %v1618_v21  ;;  %v1636_v62 = vpop.eup %1635 }
 0x379   : > { %v1062_v5 = vmul.f32 %v1636_v62, %v1874_v22 }
 0x37a   : > { %v1067_v61 = vpack.c.bf16 %v1061_v60, %v1060_v59 }
 0x37c   : > { %1564 = vmatmul.mubr.msk.bf16.vlgmr.msra.gmra.mrb[24].mxu1 %vm976_vm4, %v1067_v61 }
 0x37d   : > { %v1638_v2 = vpop.eup %1637  ;;  %1574 = vmatpush3.bf16.msra.mxu1 %v1220_v0  ;;  %1575 = vmatprep.mubr.msk.bf16.mxu1 %vm1652_vm0, %v1651_v1 }
 0x37e   : > { %v1640_v4 = vpop.eup %1639  ;;  %v1063_v10 = vmul.f32 %v1638_v2, %v1624_v26 }
 0x37f   : > { %v1064_v15 = vmul.f32 %v1640_v4, %v1622_v25 }
 0x380   : > { %v1068_v13 = vpack.c.bf16 %v1063_v10, %v1062_v5 }
 0x381   : > { %v1642_v11 = vpop.eup %1641 }
 0x382   : > { %v1065_v16 = vmul.f32 %v1642_v11, %v1626_v31  ;;  %1570 = vmatmul.mubr.msk.bf16.vlgmr.msra.gmra.mrb[28].mxu0 %vm976_vm4, %v1068_v13 }
 0x384   : > { %v1069_v17 = vpack.c.bf16 %v1065_v16, %v1064_v15 }
 0x386   : > { %1576 = vmatmul.mubr.msk.bf16.vlgmr.msra.gmra.mrb[28].mxu1 %vm976_vm4, %v1069_v17 }
 0x449   : > { %v1115_v18 = vpop.f32.mrb[24].mxu0 }
 0x44a   : > { %v1559_v19 = vpop.f32.mrb[25].mxu0  ;;  %v1116_v40 = vadd.f32 %v1115_v18, %v523_v9 }
 0x44b   : > { %v1118_v20 = vpop.f32.mrb[26].mxu0 }
 0x44c   : > { %v1560_v21 = vpop.f32.mrb[27].mxu0  ;;  %v1263_v29 = vmax.f32 %v1116_v40, 0.0  ;;  %v1119_v48 = vadd.f32 %v1118_v20, %v524_v7 }
 0x44e   : > { %v1264_v9 = vmax.f32 %v1119_v48, 0.0 }
 0x44f   : > { %v1162_v23 = vpop.f32.mrb[24].mxu1 }
 0x450   : > { %v1163_v1 = vadd.f32 %v1162_v23, %v525_v12  ;;  %v1565_v24 = vpop.f32.mrb[25].mxu1 }
 0x451   : > { %v1165_v22 = vpop.f32.mrb[26].mxu1 }
 0x452   : > { %v1265_v26 = vmax.f32 %v1163_v1, 0.0  ;;  %v1166_v25 = vadd.f32 %v1165_v22, %v526_v14  ;;  %v1566_v27 = vpop.f32.mrb[27].mxu1 }
 0x454   : > { %v1266_v28 = vmax.f32 %v1166_v25, 0.0  ;;  %1273 = vrot.lane.b32.xlu1 %v1265_v26, %s1654_s22 }
 0x455   : > { %v1209_v31 = vpop.f32.mrb[28].mxu0 }
 0x456   : > { %v1210_v32 = vadd.f32 %v1209_v31, %v527_v44  ;;  %v1571_v35 = vpop.f32.mrb[29].mxu0  ;;  %1275 = vrot.lane.b32.xlu0 %v1266_v28, %s1654_s22 }
 0x457   : > { %v1212_v36 = vpop.f32.mrb[30].mxu0 }
 0x458   : > { %v1267_v37 = vmax.f32 %v1210_v32, 0.0  ;;  %v1213_v6 = vadd.f32 %v1212_v36, %v528_v45  ;;  %v1572_v12 = vpop.f32.mrb[31].mxu0 }
 0x459   : > { %v1256_v38 = vpop.f32.mrb[28].mxu1 }
 0x45a   : > { %v1257_v39 = vadd.f32 %v1256_v38, %v529_v53  ;;  %v1577_v41 = vpop.f32.mrb[29].mxu1  ;;  %1281 = vrot.lane.b32.xlu1 %v1267_v37, %s1655_s23  ;;  %v1268_v43 = vmax.f32 %v1213_v6, 0.0 }
 0x45b   : > { %v1259_v8 = vpop.f32.mrb[30].mxu1 }
 0x45c   : > { %v1269_v14 = vmax.f32 %v1257_v39, 0.0  ;;  %v1578_v42 = vpop.f32.mrb[31].mxu1  ;;  %v1260_v46 = vadd.f32 %v1259_v8, %v530_v54 }
 0x45e   : > { %1289 = vrot.lane.b32.xlu0 %v1269_v14, %s1656_s24  ;;  %1283 = vrot.lane.b32.xlu1 %v1268_v43, %s1655_s23  ;;  %v1270_v44 = vmax.f32 %v1260_v46, 0.0 }
 0x462   : > { %1291 = vrot.lane.b32.xlu1 %v1270_v44, %s1656_s24 }
 0x4c6   : > { %v1274_v47 = vpop.permute.xlu1 %1273 }
 0x4c7   : > { %v1295_v49 = vsel %vm778_vm2, %v1263_v29, %v1274_v47 }
 0x4c8   : > { %v1276_v45 = vpop.permute.xlu0 %1275 }
 0x4c9   : > { %v1296_v53 = vsel %vm778_vm2, %v1264_v9, %v1276_v45 }
 0x4cc   : > { %v1282_v33 = vpop.permute.xlu1 %1281 }
 0x4cd   : > { %v1298_v50 = vsel %vm1297_vm6, %v1295_v49, %v1282_v33 }
 0x4d0   : > { %v1290_v51 = vpop.permute.xlu0 %1289  ;;  %v1284_v3 = vpop.permute.xlu1 %1283 }
 0x4d1   : > { %v1301_v52 = vsel %vm1300_vm7, %v1298_v50, %v1290_v51  ;;  %v1299_v54 = vsel %vm1297_vm6, %v1296_v53, %v1284_v3 }
 0x4d2   : > { %1303 = vst.msk [vmem:[%s244_s28] sm:$0xff] %vm283_vm1, %v1301_v52 }
 0x4d4   : > { %v1292_v63 = vpop.permute.xlu1 %1291 }
 0x4d5   : > { %v1302_v7 = vsel %vm1300_vm7, %v1299_v54, %v1292_v63 }
 0x4d6   : > { %1305 = vst.msk [vmem:[%s244_s28 + $0x8] sm:$0x3] %vm1304_vm8, %v1302_v7 }
 0x4d7 PF: > { %s15_s18 = sadd.s32 1, %s1649_s18  }
 0x4d8   : > { %p12_p4 = scmp.ge.s32.totalorder %s15_s18, 4  }
 0x4da   :  { %14 = sbr.rel (!%p12_p4) target bundleno = 1 (0x1), region = 73 }

</bundles_post_ra>
